<compile_context>
chip_gen: v5e
topology: v5e:2x2
jax: 0.10.0
libtpu: 0.0.40
codegen_flags: <defaults>
</compile_context>

<pallas_src>
import functools

import jax
import jax.numpy as jnp
from jax import lax
from jax.experimental import pallas as pl
from jax.experimental.pallas import tpu as pltpu

LANE = 128
SUBLANE = 8


def _round_up(x, m):
    return ((x + m - 1) // m) * m


# ----------------------------- Pallas kernel -------------------------------
def resmlp_kernel(x_ref, w1_ref, b1_ref, w2_ref, b2_ref,
                  rw1_ref, rb1_ref, rw2_ref, rb2_ref,
                  wo_ref, bo_ref, out_ref, *, in_features, class_pad):
    tile_b = x_ref.shape[0]
    fc_pad = w1_ref.shape[0]          # in_features * class_pad
    wdt = w1_ref.dtype                # f32 or bf16 (dot-input dtype)

    # ---- layer 1: fused one-hot built in-kernel (never materialized in HBM).
    # Column f*class_pad + x[:, f] is set to 1 for each feature f; features
    # occupy disjoint column ranges so a sum of equality masks is exact.
    # One MXU dot replaces the previous 4 accumulated per-feature dots.
    iota = lax.broadcasted_iota(jnp.int32, (tile_b, fc_pad), 1)
    x = x_ref[...]                                        # (tile_b, F) int32
    oh = jnp.zeros((tile_b, fc_pad), jnp.float32)
    for f in range(in_features):                          # static, tiny
        tgt = x[:, f:f + 1] + f * class_pad               # (tile_b, 1)
        oh = oh + (iota == tgt).astype(jnp.float32)
    h = jnp.dot(oh.astype(wdt), w1_ref[...],
                preferred_element_type=jnp.float32)
    h = jnp.maximum(h + b1_ref[...], 0.0)

    # ---- layer 2: Linear + ReLU
    h = jnp.dot(h.astype(wdt), w2_ref[...],
                preferred_element_type=jnp.float32)
    h = jnp.maximum(h + b2_ref[...], 0.0)

    # ---- residual blocks: Linear -> ReLU -> Linear, + skip, ReLU
    nr = rw1_ref.shape[0]                                 # static
    for i in range(nr):
        skip = h
        t = jnp.dot(h.astype(wdt), rw1_ref[i],
                    preferred_element_type=jnp.float32)
        t = jnp.maximum(t + rb1_ref[i], 0.0)
        t = jnp.dot(t.astype(wdt), rw2_ref[i],
                    preferred_element_type=jnp.float32)
        t = t + rb2_ref[i]
        h = jnp.maximum(t + skip, 0.0)

    # ---- output head: lane-dense padded store (wrapper slices real columns)
    o = jnp.dot(h.astype(wdt), wo_ref[...],
                preferred_element_type=jnp.float32)
    out_ref[...] = o + bo_ref[...]


# ------------------------------- wrapper ------------------------------------
def _choose_tile_b(batch):
    """Tiny batches: one tile of round_up(B, 8) rows (no dead-row padding).
    Large batches: >= 2 tiles of <= 512 rows (MXU fill + megacore on v7x)."""
    b8 = _round_up(batch, SUBLANE)
    if b8 <= 256:
        return b8
    n_tiles = max(2, -(-b8 // 512))
    return _round_up(-(-b8 // n_tiles), SUBLANE)


def resmlp_forward(x_int, padded_params, *, in_features, in_classes_pad,
                   out_features, tile_b=None):
    (w1, b1, w2, b2, rw1, rb1, rw2, rb2, wo, bo) = padded_params
    B = x_int.shape[0]
    if tile_b is None:
        tile_b = _choose_tile_b(B)
    b_pad = _round_up(B, tile_b)
    x_p = jnp.pad(x_int.astype(jnp.int32), ((0, b_pad - B), (0, 0)))

    fc_pad, n1p = w1.shape
    n2p = w2.shape[1]
    outp = wo.shape[1]
    nr = rw1.shape[0]
    grid = (b_pad // tile_b,)

    kernel = functools.partial(resmlp_kernel, in_features=in_features,
                               class_pad=in_classes_pad)

    flops = 2 * b_pad * (fc_pad * n1p + n1p * n2p
                         + nr * 2 * n2p * n2p + n2p * outp)
    bytes_accessed = (x_p.size * 4
                      + sum(int(p.size) * p.dtype.itemsize
                            for p in padded_params)
                      + b_pad * outp * 4)
    cost = pl.CostEstimate(flops=flops, transcendentals=0,
                           bytes_accessed=bytes_accessed)

    const_2d = lambda i: (0, 0)
    const_3d = lambda i: (0, 0, 0)

    out_pad = pl.pallas_call(
        kernel,
        out_shape=jax.ShapeDtypeStruct((b_pad, outp), jnp.float32),
        grid_spec=pltpu.PrefetchScalarGridSpec(
            num_scalar_prefetch=0,
            grid=grid,
            in_specs=[
                pl.BlockSpec((tile_b, in_features), lambda i: (i, 0)),  # x tile
                pl.BlockSpec((fc_pad, n1p), const_2d),   # w1 (VMEM-resident)
                pl.BlockSpec((1, n1p), const_2d),        # b1
                pl.BlockSpec((n1p, n2p), const_2d),      # w2
                pl.BlockSpec((1, n2p), const_2d),        # b2
                pl.BlockSpec((nr, n2p, n2p), const_3d),  # rw1
                pl.BlockSpec((nr, 1, n2p), const_3d),    # rb1
                pl.BlockSpec((nr, n2p, n2p), const_3d),  # rw2
                pl.BlockSpec((nr, 1, n2p), const_3d),    # rb2
                pl.BlockSpec((n2p, outp), const_2d),     # wo
                pl.BlockSpec((1, outp), const_2d),       # bo
            ],
            out_specs=pl.BlockSpec((tile_b, outp), lambda i: (i, 0)),
        ),
        compiler_params=pltpu.CompilerParams(
            dimension_semantics=("parallel",),           # megacore on v7x
        ),
        cost_estimate=cost,
    )(x_p, *padded_params)
    return out_pad[:B, :out_features]


# --------------------------- parameter creation ------------------------------
def make_linear(key, fan_in, fan_out):
    # PyTorch nn.Linear default: U(-1/sqrt(fan_in), 1/sqrt(fan_in)) for W and b.
    kw, kb = jax.random.split(key)
    bound = 1.0 / jnp.sqrt(jnp.float32(fan_in))
    w = jax.random.uniform(kw, (fan_in, fan_out), jnp.float32, -bound, bound)
    b = jax.random.uniform(kb, (1, fan_out), jnp.float32, -bound, bound)
    return w, b


def make_params(key, in_features, in_classes, n1, n2, nr, out_features):
    keys = jax.random.split(key, 3 + 2 * nr)
    w1, b1 = make_linear(keys[0], in_features * in_classes, n1)
    w2, b2 = make_linear(keys[1], n1, n2)
    rw1, rb1, rw2, rb2 = [], [], [], []
    for i in range(nr):
        wa, ba = make_linear(keys[2 + 2 * i], n2, n2)
        wb, bb = make_linear(keys[3 + 2 * i], n2, n2)
        rw1.append(wa); rb1.append(ba); rw2.append(wb); rb2.append(bb)
    rw1 = jnp.stack(rw1)            # (nr, n2, n2)
    rb1 = jnp.stack(rb1)            # (nr, 1, n2)
    rw2 = jnp.stack(rw2)            # (nr, n2, n2)
    rb2 = jnp.stack(rb2)            # (nr, 1, n2)
    wo, bo = make_linear(keys[2 + 2 * nr], n2, out_features)
    return (w1, b1, w2, b2, rw1, rb1, rw2, rb2, wo, bo)


def pad_params(params, *, in_features, in_classes, weight_dtype=jnp.float32):
    """Zero-pad (once, off the hot path):
      * class dim  -> multiple of 8 (f32 sublane), NOT 128: no padding FLOPs
        blow-up on layer 1.
      * n1/n2/out  -> multiple of 128 lanes: lane-aligned MXU tiles and a
        lane-dense output store.
    Layer-1 rows are regrouped per feature: row f*C + c -> padded row
    f*C_pad + c so the in-kernel fused one-hot lines up.  Weight matrices
    are cast to `weight_dtype` (bf16 => ~2x MXU throughput, f32 accumulation
    kept in-kernel); biases stay f32."""
    w1, b1, w2, b2, rw1, rb1, rw2, rb2, wo, bo = params
    C = in_classes
    cp = _round_up(C, SUBLANE)
    n1, n2, out = w1.shape[1], w2.shape[1], wo.shape[1]
    n1p, n2p, outp = _round_up(n1, LANE), _round_up(n2, LANE), _round_up(out, LANE)
    nr = rw1.shape[0]

    w1p = jnp.zeros((in_features, cp, n1p), jnp.float32)
    w1p = w1p.at[:, :C, :n1].set(w1.reshape(in_features, C, n1))
    w1p = w1p.reshape(in_features * cp, n1p).astype(weight_dtype)

    b1p = jnp.zeros((1, n1p), jnp.float32).at[:, :n1].set(b1)
    w2p = jnp.zeros((n1p, n2p), jnp.float32).at[:n1, :n2].set(w2).astype(weight_dtype)
    b2p = jnp.zeros((1, n2p), jnp.float32).at[:, :n2].set(b2)
    rw1p = jnp.zeros((nr, n2p, n2p), jnp.float32).at[:, :n2, :n2].set(rw1).astype(weight_dtype)
    rb1p = jnp.zeros((nr, 1, n2p), jnp.float32).at[:, :, :n2].set(rb1)
    rw2p = jnp.zeros((nr, n2p, n2p), jnp.float32).at[:, :n2, :n2].set(rw2).astype(weight_dtype)
    rb2p = jnp.zeros((nr, 1, n2p), jnp.float32).at[:, :, :n2].set(rb2)
    wop = jnp.zeros((n2p, outp), jnp.float32).at[:n2, :out].set(wo).astype(weight_dtype)
    bop = jnp.zeros((1, outp), jnp.float32).at[:, :out].set(bo)
    return (w1p, b1p, w2p, b2p, rw1p, rb1p, rw2p, rb2p, wop, bop), cp


# ----------------------------- pure-JAX reference ----------------------------
def resmlp_ref(x_int, params, *, in_classes):
    w1, b1, w2, b2, rw1, rb1, rw2, rb2, wo, bo = params
    B = x_int.shape[0]
    h = jax.nn.one_hot(x_int, in_classes, dtype=jnp.float32).reshape(B, -1)
    h = jnp.maximum(h @ w1 + b1, 0.0)
    h = jnp.maximum(h @ w2 + b2, 0.0)
    for i in range(rw1.shape[0]):
        skip = h
        t = jnp.maximum(h @ rw1[i] + rb1[i], 0.0)
        t = t @ rw2[i] + rb2[i]
        h = jnp.maximum(t + skip, 0.0)
    return h @ wo + bo


# ---------------------------------- main -------------------------------------
if __name__ == "__main__":
    # small shapes consistent with the module
    B, in_features, in_classes = 2, 4, 8
    n1, n2, nr, out_features = 32, 32, 2, 8

    key = jax.random.PRNGKey(0)
    kx, kp = jax.random.split(key)
    x = jax.random.randint(kx, (B, in_features), 0, in_classes, dtype=jnp.int32)
    params = make_params(kp, in_features, in_classes, n1, n2, nr, out_features)
    ref = resmlp_ref(x, params, in_classes=in_classes)

    # f32 dot-input path: bit-parity with the PyTorch/JAX reference.
    pparams_f32, in_classes_pad = pad_params(
        params, in_features=in_features, in_classes=in_classes,
        weight_dtype=jnp.float32)
    out = resmlp_forward(x, pparams_f32,
                         in_features=in_features,
                         in_classes_pad=in_classes_pad,
                         out_features=out_features)
    out = jax.block_until_ready(out)
    assert out.shape == (B, out_features)
    assert jnp.allclose(out, ref, atol=1e-5, rtol=1e-5)

    # bf16 dot-input path (f32 accumulation): ~2x MXU throughput on v5e/v6e/v7x.
    pparams_bf16, in_classes_pad = pad_params(
        params, in_features=in_features, in_classes=in_classes,
        weight_dtype=jnp.bfloat16)
    out_bf16 = resmlp_forward(x, pparams_bf16,
                              in_features=in_features,
                              in_classes_pad=in_classes_pad,
                              out_features=out_features)
    out_bf16 = jax.block_until_ready(out_bf16)
    assert out_bf16.shape == (B, out_features)
    assert jnp.allclose(out_bf16, ref, atol=1e-1, rtol=1e-1)

    print("KERNEL_OK")
</pallas_src>

<mosaic_0001>
module attributes {stable_mosaic.version = 11 : i64} {
  func.func @resmlp_kernel(%arg0: i32, %arg1: memref<8x4xi32, #tpu.memory_space<vmem>>, %arg2: memref<32x128xf32, #tpu.memory_space<vmem>>, %arg3: memref<1x128xf32, #tpu.memory_space<vmem>>, %arg4: memref<128x128xf32, #tpu.memory_space<vmem>>, %arg5: memref<1x128xf32, #tpu.memory_space<vmem>>, %arg6: memref<2x128x128xf32, #tpu.memory_space<vmem>>, %arg7: memref<2x1x128xf32, #tpu.memory_space<vmem>>, %arg8: memref<2x128x128xf32, #tpu.memory_space<vmem>>, %arg9: memref<2x1x128xf32, #tpu.memory_space<vmem>>, %arg10: memref<128x128xf32, #tpu.memory_space<vmem>>, %arg11: memref<1x128xf32, #tpu.memory_space<vmem>>, %arg12: memref<8x128xf32, #tpu.memory_space<vmem>>) attributes {dimension_semantics = [#tpu.dimension_semantics<parallel>], iteration_bounds = array<i64: 1>, scalar_prefetch = 0 : i64, scratch_operands = 0 : i64, tpu.core_type = #tpu.core_type<tc>, window_params = [{transform_indices = @transform_0, window_bounds = array<i64: 8, 4>}, {pipeline_mode = #tpu.pipeline_mode<synchronous>, transform_indices = @transform_1, window_bounds = array<i64: 32, 128>}, {pipeline_mode = #tpu.pipeline_mode<synchronous>, transform_indices = @transform_2, window_bounds = array<i64: 1, 128>}, {pipeline_mode = #tpu.pipeline_mode<synchronous>, transform_indices = @transform_3, window_bounds = array<i64: 128, 128>}, {pipeline_mode = #tpu.pipeline_mode<synchronous>, transform_indices = @transform_4, window_bounds = array<i64: 1, 128>}, {pipeline_mode = #tpu.pipeline_mode<synchronous>, transform_indices = @transform_5, window_bounds = array<i64: 2, 128, 128>}, {pipeline_mode = #tpu.pipeline_mode<synchronous>, transform_indices = @transform_6, window_bounds = array<i64: 2, 1, 128>}, {pipeline_mode = #tpu.pipeline_mode<synchronous>, transform_indices = @transform_7, window_bounds = array<i64: 2, 128, 128>}, {pipeline_mode = #tpu.pipeline_mode<synchronous>, transform_indices = @transform_8, window_bounds = array<i64: 2, 1, 128>}, {pipeline_mode = #tpu.pipeline_mode<synchronous>, transform_indices = @transform_9, window_bounds = array<i64: 128, 128>}, {pipeline_mode = #tpu.pipeline_mode<synchronous>, transform_indices = @transform_10, window_bounds = array<i64: 1, 128>}, {transform_indices = @transform_11, window_bounds = array<i64: 8, 128>}]} {
    %0 = tpu.iota {dimensions = array<i32: 1>} : vector<8x32xi32>
    %c0 = arith.constant 0 : index
    %c0_0 = arith.constant 0 : index
    %1 = vector.load %arg1[%c0, %c0_0] : memref<8x4xi32, #tpu.memory_space<vmem>>, vector<8x4xi32>
    %cst = arith.constant 0.000000e+00 : f32
    %2 = vector.broadcast %cst : f32 to vector<8x32xf32>
    %3 = vector.extract_strided_slice %1 {offsets = [0, 0], sizes = [8, 1], strides = [1, 1]} : vector<8x4xi32> to vector<8x1xi32>
    %c0_i32 = arith.constant 0 : i32
    %4 = vector.broadcast %c0_i32 : i32 to vector<8x1xi32>
    %5 = arith.addi %3, %4 : vector<8x1xi32>
    %6 = vector.broadcast %5 : vector<8x1xi32> to vector<8x32xi32>
    %7 = arith.cmpi eq, %0, %6 : vector<8x32xi32>
    %8 = arith.extui %7 : vector<8x32xi1> to vector<8x32xi32>
    %9 = arith.sitofp %8 : vector<8x32xi32> to vector<8x32xf32>
    %10 = arith.addf %2, %9 : vector<8x32xf32>
    %11 = vector.extract_strided_slice %1 {offsets = [0, 1], sizes = [8, 1], strides = [1, 1]} : vector<8x4xi32> to vector<8x1xi32>
    %c8_i32 = arith.constant 8 : i32
    %12 = vector.broadcast %c8_i32 : i32 to vector<8x1xi32>
    %13 = arith.addi %11, %12 : vector<8x1xi32>
    %14 = vector.broadcast %13 : vector<8x1xi32> to vector<8x32xi32>
    %15 = arith.cmpi eq, %0, %14 : vector<8x32xi32>
    %16 = arith.extui %15 : vector<8x32xi1> to vector<8x32xi32>
    %17 = arith.sitofp %16 : vector<8x32xi32> to vector<8x32xf32>
    %18 = arith.addf %10, %17 : vector<8x32xf32>
    %19 = vector.extract_strided_slice %1 {offsets = [0, 2], sizes = [8, 1], strides = [1, 1]} : vector<8x4xi32> to vector<8x1xi32>
    %c16_i32 = arith.constant 16 : i32
    %20 = vector.broadcast %c16_i32 : i32 to vector<8x1xi32>
    %21 = arith.addi %19, %20 : vector<8x1xi32>
    %22 = vector.broadcast %21 : vector<8x1xi32> to vector<8x32xi32>
    %23 = arith.cmpi eq, %0, %22 : vector<8x32xi32>
    %24 = arith.extui %23 : vector<8x32xi1> to vector<8x32xi32>
    %25 = arith.sitofp %24 : vector<8x32xi32> to vector<8x32xf32>
    %26 = arith.addf %18, %25 : vector<8x32xf32>
    %27 = vector.extract_strided_slice %1 {offsets = [0, 3], sizes = [8, 1], strides = [1, 1]} : vector<8x4xi32> to vector<8x1xi32>
    %c24_i32 = arith.constant 24 : i32
    %28 = vector.broadcast %c24_i32 : i32 to vector<8x1xi32>
    %29 = arith.addi %27, %28 : vector<8x1xi32>
    %30 = vector.broadcast %29 : vector<8x1xi32> to vector<8x32xi32>
    %31 = arith.cmpi eq, %0, %30 : vector<8x32xi32>
    %32 = arith.extui %31 : vector<8x32xi1> to vector<8x32xi32>
    %33 = arith.sitofp %32 : vector<8x32xi32> to vector<8x32xf32>
    %34 = arith.addf %26, %33 : vector<8x32xf32>
    %c0_1 = arith.constant 0 : index
    %c0_2 = arith.constant 0 : index
    %35 = vector.load %arg2[%c0_1, %c0_2] : memref<32x128xf32, #tpu.memory_space<vmem>>, vector<32x128xf32>
    %cst_3 = arith.constant dense<0.000000e+00> : vector<8x128xf32>
    %36 = tpu.matmul %34, %35, %cst_3 {dimension_numbers = #tpu.dot_dimension_numbers<[1], [0], [0], [1], [0, 0, 1, 1], [], []>} : vector<8x32xf32>, vector<32x128xf32>, vector<8x128xf32> -> vector<8x128xf32>
    %c0_4 = arith.constant 0 : index
    %c0_5 = arith.constant 0 : index
    %37 = vector.load %arg3[%c0_4, %c0_5] : memref<1x128xf32, #tpu.memory_space<vmem>>, vector<1x128xf32>
    %38 = vector.broadcast %37 : vector<1x128xf32> to vector<8x128xf32>
    %39 = arith.addf %36, %38 : vector<8x128xf32>
    %cst_6 = arith.constant 0.000000e+00 : f32
    %40 = vector.broadcast %cst_6 : f32 to vector<8x128xf32>
    %41 = arith.maximumf %39, %40 : vector<8x128xf32>
    %c0_7 = arith.constant 0 : index
    %c0_8 = arith.constant 0 : index
    %42 = vector.load %arg4[%c0_7, %c0_8] : memref<128x128xf32, #tpu.memory_space<vmem>>, vector<128x128xf32>
    %cst_9 = arith.constant dense<0.000000e+00> : vector<8x128xf32>
    %43 = tpu.matmul %41, %42, %cst_9 {dimension_numbers = #tpu.dot_dimension_numbers<[1], [0], [0], [1], [0, 0, 1, 1], [], []>} : vector<8x128xf32>, vector<128x128xf32>, vector<8x128xf32> -> vector<8x128xf32>
    %c0_10 = arith.constant 0 : index
    %c0_11 = arith.constant 0 : index
    %44 = vector.load %arg5[%c0_10, %c0_11] : memref<1x128xf32, #tpu.memory_space<vmem>>, vector<1x128xf32>
    %45 = vector.broadcast %44 : vector<1x128xf32> to vector<8x128xf32>
    %46 = arith.addf %43, %45 : vector<8x128xf32>
    %cst_12 = arith.constant 0.000000e+00 : f32
    %47 = vector.broadcast %cst_12 : f32 to vector<8x128xf32>
    %48 = arith.maximumf %46, %47 : vector<8x128xf32>
    %c0_13 = arith.constant 0 : index
    %c0_14 = arith.constant 0 : index
    %c0_15 = arith.constant 0 : index
    %49 = vector.load %arg6[%c0_13, %c0_14, %c0_15] : memref<2x128x128xf32, #tpu.memory_space<vmem>>, vector<1x128x128xf32>
    %50 = vector.shape_cast %49 : vector<1x128x128xf32> to vector<128x128xf32>
    %cst_16 = arith.constant dense<0.000000e+00> : vector<8x128xf32>
    %51 = tpu.matmul %48, %50, %cst_16 {dimension_numbers = #tpu.dot_dimension_numbers<[1], [0], [0], [1], [0, 0, 1, 1], [], []>} : vector<8x128xf32>, vector<128x128xf32>, vector<8x128xf32> -> vector<8x128xf32>
    %c0_17 = arith.constant 0 : index
    %c0_18 = arith.constant 0 : index
    %c0_19 = arith.constant 0 : index
    %52 = vector.load %arg7[%c0_17, %c0_18, %c0_19] : memref<2x1x128xf32, #tpu.memory_space<vmem>>, vector<1x1x128xf32>
    %53 = vector.shape_cast %52 : vector<1x1x128xf32> to vector<1x128xf32>
    %54 = vector.broadcast %53 : vector<1x128xf32> to vector<8x128xf32>
    %55 = arith.addf %51, %54 : vector<8x128xf32>
    %cst_20 = arith.constant 0.000000e+00 : f32
    %56 = vector.broadcast %cst_20 : f32 to vector<8x128xf32>
    %57 = arith.maximumf %55, %56 : vector<8x128xf32>
    %c0_21 = arith.constant 0 : index
    %c0_22 = arith.constant 0 : index
    %c0_23 = arith.constant 0 : index
    %58 = vector.load %arg8[%c0_21, %c0_22, %c0_23] : memref<2x128x128xf32, #tpu.memory_space<vmem>>, vector<1x128x128xf32>
    %59 = vector.shape_cast %58 : vector<1x128x128xf32> to vector<128x128xf32>
    %cst_24 = arith.constant dense<0.000000e+00> : vector<8x128xf32>
    %60 = tpu.matmul %57, %59, %cst_24 {dimension_numbers = #tpu.dot_dimension_numbers<[1], [0], [0], [1], [0, 0, 1, 1], [], []>} : vector<8x128xf32>, vector<128x128xf32>, vector<8x128xf32> -> vector<8x128xf32>
    %c0_25 = arith.constant 0 : index
    %c0_26 = arith.constant 0 : index
    %c0_27 = arith.constant 0 : index
    %61 = vector.load %arg9[%c0_25, %c0_26, %c0_27] : memref<2x1x128xf32, #tpu.memory_space<vmem>>, vector<1x1x128xf32>
    %62 = vector.shape_cast %61 : vector<1x1x128xf32> to vector<1x128xf32>
    %63 = vector.broadcast %62 : vector<1x128xf32> to vector<8x128xf32>
    %64 = arith.addf %60, %63 : vector<8x128xf32>
    %65 = arith.addf %64, %48 : vector<8x128xf32>
    %cst_28 = arith.constant 0.000000e+00 : f32
    %66 = vector.broadcast %cst_28 : f32 to vector<8x128xf32>
    %67 = arith.maximumf %65, %66 : vector<8x128xf32>
    %c1 = arith.constant 1 : index
    %c0_29 = arith.constant 0 : index
    %c0_30 = arith.constant 0 : index
    %68 = vector.load %arg6[%c1, %c0_29, %c0_30] : memref<2x128x128xf32, #tpu.memory_space<vmem>>, vector<1x128x128xf32>
    %69 = vector.shape_cast %68 : vector<1x128x128xf32> to vector<128x128xf32>
    %cst_31 = arith.constant dense<0.000000e+00> : vector<8x128xf32>
    %70 = tpu.matmul %67, %69, %cst_31 {dimension_numbers = #tpu.dot_dimension_numbers<[1], [0], [0], [1], [0, 0, 1, 1], [], []>} : vector<8x128xf32>, vector<128x128xf32>, vector<8x128xf32> -> vector<8x128xf32>
    %c1_32 = arith.constant 1 : index
    %c0_33 = arith.constant 0 : index
    %c0_34 = arith.constant 0 : index
    %71 = vector.load %arg7[%c1_32, %c0_33, %c0_34] : memref<2x1x128xf32, #tpu.memory_space<vmem>>, vector<1x1x128xf32>
    %72 = vector.shape_cast %71 : vector<1x1x128xf32> to vector<1x128xf32>
    %73 = vector.broadcast %72 : vector<1x128xf32> to vector<8x128xf32>
    %74 = arith.addf %70, %73 : vector<8x128xf32>
    %cst_35 = arith.constant 0.000000e+00 : f32
    %75 = vector.broadcast %cst_35 : f32 to vector<8x128xf32>
    %76 = arith.maximumf %74, %75 : vector<8x128xf32>
    %c1_36 = arith.constant 1 : index
    %c0_37 = arith.constant 0 : index
    %c0_38 = arith.constant 0 : index
    %77 = vector.load %arg8[%c1_36, %c0_37, %c0_38] : memref<2x128x128xf32, #tpu.memory_space<vmem>>, vector<1x128x128xf32>
    %78 = vector.shape_cast %77 : vector<1x128x128xf32> to vector<128x128xf32>
    %cst_39 = arith.constant dense<0.000000e+00> : vector<8x128xf32>
    %79 = tpu.matmul %76, %78, %cst_39 {dimension_numbers = #tpu.dot_dimension_numbers<[1], [0], [0], [1], [0, 0, 1, 1], [], []>} : vector<8x128xf32>, vector<128x128xf32>, vector<8x128xf32> -> vector<8x128xf32>
    %c1_40 = arith.constant 1 : index
    %c0_41 = arith.constant 0 : index
    %c0_42 = arith.constant 0 : index
    %80 = vector.load %arg9[%c1_40, %c0_41, %c0_42] : memref<2x1x128xf32, #tpu.memory_space<vmem>>, vector<1x1x128xf32>
    %81 = vector.shape_cast %80 : vector<1x1x128xf32> to vector<1x128xf32>
    %82 = vector.broadcast %81 : vector<1x128xf32> to vector<8x128xf32>
    %83 = arith.addf %79, %82 : vector<8x128xf32>
    %84 = arith.addf %83, %67 : vector<8x128xf32>
    %cst_43 = arith.constant 0.000000e+00 : f32
    %85 = vector.broadcast %cst_43 : f32 to vector<8x128xf32>
    %86 = arith.maximumf %84, %85 : vector<8x128xf32>
    %c0_44 = arith.constant 0 : index
    %c0_45 = arith.constant 0 : index
    %87 = vector.load %arg10[%c0_44, %c0_45] : memref<128x128xf32, #tpu.memory_space<vmem>>, vector<128x128xf32>
    %cst_46 = arith.constant dense<0.000000e+00> : vector<8x128xf32>
    %88 = tpu.matmul %86, %87, %cst_46 {dimension_numbers = #tpu.dot_dimension_numbers<[1], [0], [0], [1], [0, 0, 1, 1], [], []>} : vector<8x128xf32>, vector<128x128xf32>, vector<8x128xf32> -> vector<8x128xf32>
    %c0_47 = arith.constant 0 : index
    %c0_48 = arith.constant 0 : index
    %89 = vector.load %arg11[%c0_47, %c0_48] : memref<1x128xf32, #tpu.memory_space<vmem>>, vector<1x128xf32>
    %90 = vector.broadcast %89 : vector<1x128xf32> to vector<8x128xf32>
    %91 = arith.addf %88, %90 : vector<8x128xf32>
    %c0_49 = arith.constant 0 : index
    %c0_50 = arith.constant 0 : index
    %92 = vector.load %arg12[%c0_49, %c0_50] : memref<8x128xf32, #tpu.memory_space<vmem>>, vector<8x128xf32>
    tpu.vector_store %arg12[%c0_49, %c0_50], %91 {strides = array<i32>} : memref<8x128xf32, #tpu.memory_space<vmem>>, vector<8x128xf32>,
    return
  }
  func.func @transform_0(%arg0: i32) -> (i32, i32) {
    %c0_i32 = arith.constant 0 : i32
    %c0_i32_0 = arith.constant 0 : i32
    return %arg0, %c0_i32 : i32, i32
  }
  func.func @transform_1(%arg0: i32) -> (i32, i32) {
    %c0_i32 = arith.constant 0 : i32
    %c0_i32_0 = arith.constant 0 : i32
    %c0_i32_1 = arith.constant 0 : i32
    return %c0_i32, %c0_i32_0 : i32, i32
  }
  func.func @transform_2(%arg0: i32) -> (i32, i32) {
    %c0_i32 = arith.constant 0 : i32
    %c0_i32_0 = arith.constant 0 : i32
    %c0_i32_1 = arith.constant 0 : i32
    return %c0_i32, %c0_i32_0 : i32, i32
  }
  func.func @transform_3(%arg0: i32) -> (i32, i32) {
    %c0_i32 = arith.constant 0 : i32
    %c0_i32_0 = arith.constant 0 : i32
    %c0_i32_1 = arith.constant 0 : i32
    return %c0_i32, %c0_i32_0 : i32, i32
  }
  func.func @transform_4(%arg0: i32) -> (i32, i32) {
    %c0_i32 = arith.constant 0 : i32
    %c0_i32_0 = arith.constant 0 : i32
    %c0_i32_1 = arith.constant 0 : i32
    return %c0_i32, %c0_i32_0 : i32, i32
  }
  func.func @transform_5(%arg0: i32) -> (i32, i32, i32) {
    %c0_i32 = arith.constant 0 : i32
    %c0_i32_0 = arith.constant 0 : i32
    %c0_i32_1 = arith.constant 0 : i32
    %c0_i32_2 = arith.constant 0 : i32
    return %c0_i32, %c0_i32_0, %c0_i32_1 : i32, i32, i32
  }
  func.func @transform_6(%arg0: i32) -> (i32, i32, i32) {
    %c0_i32 = arith.constant 0 : i32
    %c0_i32_0 = arith.constant 0 : i32
    %c0_i32_1 = arith.constant 0 : i32
    %c0_i32_2 = arith.constant 0 : i32
    return %c0_i32, %c0_i32_0, %c0_i32_1 : i32, i32, i32
  }
  func.func @transform_7(%arg0: i32) -> (i32, i32, i32) {
    %c0_i32 = arith.constant 0 : i32
    %c0_i32_0 = arith.constant 0 : i32
    %c0_i32_1 = arith.constant 0 : i32
    %c0_i32_2 = arith.constant 0 : i32
    return %c0_i32, %c0_i32_0, %c0_i32_1 : i32, i32, i32
  }
  func.func @transform_8(%arg0: i32) -> (i32, i32, i32) {
    %c0_i32 = arith.constant 0 : i32
    %c0_i32_0 = arith.constant 0 : i32
    %c0_i32_1 = arith.constant 0 : i32
    %c0_i32_2 = arith.constant 0 : i32
    return %c0_i32, %c0_i32_0, %c0_i32_1 : i32, i32, i32
  }
  func.func @transform_9(%arg0: i32) -> (i32, i32) {
    %c0_i32 = arith.constant 0 : i32
    %c0_i32_0 = arith.constant 0 : i32
    %c0_i32_1 = arith.constant 0 : i32
    return %c0_i32, %c0_i32_0 : i32, i32
  }
  func.func @transform_10(%arg0: i32) -> (i32, i32) {
    %c0_i32 = arith.constant 0 : i32
    %c0_i32_0 = arith.constant 0 : i32
    %c0_i32_1 = arith.constant 0 : i32
    return %c0_i32, %c0_i32_0 : i32, i32
  }
  func.func @transform_11(%arg0: i32) -> (i32, i32) {
    %c0_i32 = arith.constant 0 : i32
    %c0_i32_0 = arith.constant 0 : i32
    return %arg0, %c0_i32 : i32, i32
  }
}

</mosaic_0001>

<bundles_post_ra>
// kernel: tpu_custom_call.1
= control target key start
LH: loop header
LB: loop body
LE: loop exit
PB: predicated region body
PF: predicated region fallthrough
CT: control target
= control target key end

     0   :  { %16 = vsyncpa [#allocation3], 0  ;;  %s761_s0 = inlined_call_operand.vmem [shape: s32[8,4], index: 0, kind: input, shape index: {}]   ;;  %s762_s1 = inlined_call_operand.hbm [shape: f32[32,128], index: 1, kind: input, shape index: {}]   ;;  %s763_s2 = inlined_call_operand.vmem [shape: f32[1,128], index: 2, kind: input, shape index: {}]   ;;  %s764_s3 = inlined_call_operand.hbm [shape: f32[128,128], index: 3, kind: input, shape index: {}]   ;;  %s765_s4 = inlined_call_operand.vmem [shape: f32[1,128], index: 4, kind: input, shape index: {}]   ;;  %s766_s5 = inlined_call_operand.hbm [shape: f32[2,128,128], index: 5, kind: input, shape index: {}]   ;;  %s767_s6 = inlined_call_operand.vmem [shape: f32[2,1,128], index: 6, kind: input, shape index: {}]   ;;  %s768_s7 = inlined_call_operand.hbm [shape: f32[2,128,128], index: 7, kind: input, shape index: {}]   ;;  %s769_s8 = inlined_call_operand.vmem [shape: f32[2,1,128], index: 8, kind: input, shape index: {}]   ;;  %s770_s9 = inlined_call_operand.hbm [shape: f32[128,128], index: 9, kind: input, shape index: {}]   ;;  %s771_s10 = inlined_call_operand.vmem [shape: f32[1,128], index: 10, kind: input, shape index: {}]   ;;  %s772_s11 = inlined_call_operand.hbm [shape: f32[8,128], index: 11, kind: output, shape index: {}]  }
   0x1   :  { %17 = vsyncpa [#allocation6], 0 }
   0x2   :  { %18 = vsyncpa [#allocation9], 0 }
   0x3   :  { %19 = vsyncpa [#allocation4], 0  ;;  %s41_s19 = sshll.u32 %s764_s3, 4  ;;  %s639_s20 = smov [#allocation5]   ;;  %s42_s19 = int_to_ptr.hbm [resolvable:$true] %s41_s19 }
   0x4   :  { %s43_s21 = sshll.u32 %s639_s20, 4  ;;  %s71_s24 = sshll.u32 %s768_s7, 4  ;;  %s44_s21 = int_to_ptr.vmem [resolvable:$true] %s43_s21  ;;  %s72_s24 = int_to_ptr.hbm [resolvable:$true] %s71_s24 }
   0x5   :  { %s640_s25 = smov 128   ;;  %s641_s26 = smov 8  }
   0x6   :  { %49 = dma.hbm_to_vmem [thread:$0]  %s42_s19, 2048, %s44_s21, [#allocation6], %s640_s25, %s640_s25, %s641_s26  }
   0x7   :  { %s642_s27 = smov [#allocation8]   ;;  %s26_s12 = sshll.u32 %s762_s1, 4  ;;  %s27_s12 = int_to_ptr.hbm [resolvable:$true] %s26_s12 }
   0x8   :  { %s73_s28 = sshll.u32 %s642_s27, 4  ;;  %s56_s14 = sshll.u32 %s766_s5, 4  ;;  %s74_s28 = int_to_ptr.vmem [resolvable:$true] %s73_s28  ;;  %s57_s14 = int_to_ptr.hbm [resolvable:$true] %s56_s14 }
   0x9   :  { %79 = dma.hbm_to_vmem [thread:$0]  %s72_s24, 4096, %s74_s28, [#allocation9], %s640_s25, %s640_s25, %s641_s26  }
   0xa   :  { %s643_s15 = smov [#allocation2]   ;;  %s644_s7 = smov [#allocation7]  }
   0xb   :  { %s28_s16 = sshll.u32 %s643_s15, 4  ;;  %s58_s17 = sshll.u32 %s644_s7, 4  ;;  %s29_s16 = int_to_ptr.vmem [resolvable:$true] %s28_s16  ;;  %s59_s17 = int_to_ptr.vmem [resolvable:$true] %s58_s17 }
   0xc   :  { %34 = dma.hbm_to_vmem [thread:$0]  %s27_s12, 512, %s29_s16, [#allocation3], %s640_s25, %s640_s25, %s641_s26  }
   0xd   :  { %s86_s20 = sshll.u32 %s770_s9, 4  ;;  %s645_s1 = smov [#allocation10]   ;;  %s87_s20 = int_to_ptr.hbm [resolvable:$true] %s86_s20 }
   0xe   :  { %64 = dma.hbm_to_vmem [thread:$0]  %s57_s14, 4096, %s59_s17, [#allocation6], %s640_s25, %s640_s25, %s641_s26  }
   0xf   :  { %s88_s21 = sshll.u32 %s645_s1, 4  ;;  %s89_s21 = int_to_ptr.vmem [resolvable:$true] %s88_s21 }
  0x10   :  { %94 = dma.hbm_to_vmem [thread:$0]  %s87_s20, 2048, %s89_s21, [#allocation9], %s640_s25, %s640_s25, %s641_s26  }
  0x11   :  { %631 = dma.done.wait [#allocation3], 512  }
  0x12   :  { %632 = vsyncadd [#allocation3], 4294966784 }
  0x13   :  { %633 = dma.done.wait [#allocation6], 6144  }
  0x14   :  { %634 = vsyncadd [#allocation6], 4294961152 }
  0x15   :  { %635 = dma.done.wait [#allocation9], 6144  }
  0x16   :  { %636 = vsyncadd [#allocation9], 4294961152  ;;  %v646_v0 = vmov 0   ;;  %v647_v1 = vmov 2   ;;  %v119_v2 = vld [vmem:[%s761_s0] sm:$0xff]  ;;  %v648_v6 = vmov 1   ;;  %v117_v20 = vlaneseq }
  0x17   :  { %475 = vset.pattern.permute.xlu0 %v646_v0  ;;  %477 = vset.pattern.permute.xlu1 %v647_v1  ;;  %v135_v3 = vadd.s32 16, %v119_v2  ;;  %v127_v4 = vadd.s32 8, %v119_v2  ;;  %v143_v5 = vadd.s32 24, %v119_v2  ;;  %v649_v7 = vmov 3   ;;  %v154_v8 = vld [vmem:[#allocation2 + $0x18] sm:$0xff]  ;;  %v153_v9 = vld [vmem:[#allocation2 + $0x10] sm:$0xff] }
  0x18   :  { %121 = vperm.xlu0 %475, %v119_v2   ;;  %175 = vmatpush.msra.mxu0 %v154_v8  ;;  %v152_v10 = vld [vmem:[#allocation2 + $0x8] sm:$0xff]  ;;  %v151_v11 = vld [vmem:[#allocation2] sm:$0xff]  ;;  %v199_v12 = vld [vmem:[#allocation5 + $0x78] sm:$0xff]  ;;  %v118_v25 = vand.u32 127, %v117_v20  ;;  %v650_v30 = vmov 0.0   ;;  %vm159_vm4 = vcmask 261120  }
  0x19   :  { %137 = vperm.xlu1 %477, %v135_v3   ;;  %v198_v13 = vld [vmem:[#allocation5 + $0x70] sm:$0xff]  ;;  %204 = vmatpush.msra.mxu1 %v199_v12  ;;  %v197_v14 = vld [vmem:[#allocation5 + $0x68] sm:$0xff]  ;;  %v196_v15 = vld [vmem:[#allocation5 + $0x60] sm:$0xff]  ;;  %s651_s3 = smov [#allocation11]   ;;  %s443_s16 = sshll.u32 %s772_s11, 4  ;;  %s444_s16 = int_to_ptr.hbm [resolvable:$true] %s443_s16 }
  0x1a   :  { %176 = vmatpush.msra.mxu0 %v153_v9  ;;  %v195_v16 = vld [vmem:[#allocation5 + $0x58] sm:$0xff]  ;;  %v194_v17 = vld [vmem:[#allocation5 + $0x50] sm:$0xff]  ;;  %v193_v18 = vld [vmem:[#allocation5 + $0x48] sm:$0xff]  ;;  %s441_s13 = sshll.u32 %s651_s3, 4  ;;  %s442_s13 = int_to_ptr.vmem [resolvable:$true] %s441_s13 }
  0x1b   :  { %205 = vmatpush.msra.mxu1 %v198_v13  ;;  %v192_v19 = vld [vmem:[#allocation5 + $0x40] sm:$0xff]  ;;  %v191_v22 = vld [vmem:[#allocation5 + $0x38] sm:$0xff]  ;;  %v190_v24 = vld [vmem:[#allocation5 + $0x30] sm:$0xff] }
  0x1c   :  { %177 = vmatpush.msra.mxu0 %v152_v10  ;;  %v189_v26 = vld [vmem:[#allocation5 + $0x28] sm:$0xff]  ;;  %v188_v27 = vld [vmem:[#allocation5 + $0x20] sm:$0xff]  ;;  %v187_v28 = vld [vmem:[#allocation5 + $0x18] sm:$0xff] }
  0x1d   :  { %206 = vmatpush.msra.mxu1 %v197_v14  ;;  %v186_v39 = vld [vmem:[#allocation5 + $0x10] sm:$0xff]  ;;  %v185_v40 = vld [vmem:[#allocation5 + $0x8] sm:$0xff]  ;;  %v184_v41 = vld [vmem:[#allocation5] sm:$0xff] }
  0x1e   :  { %178 = vmatpush.msra.mxu0 %v151_v11  ;;  %v240_v42 = vld [vmem:[#allocation7 + $0x78] sm:$0xff]  ;;  %v239_v43 = vld [vmem:[#allocation7 + $0x70] sm:$0xff]  ;;  %v238_v44 = vld [vmem:[#allocation7 + $0x68] sm:$0xff] }
  0x1f   :  { %207 = vmatpush.msra.mxu1 %v196_v15  ;;  %245 = vmatpush.msra.mxu2 %v240_v42  ;;  %v237_v45 = vld [vmem:[#allocation7 + $0x60] sm:$0xff]  ;;  %v236_v46 = vld [vmem:[#allocation7 + $0x58] sm:$0xff]  ;;  %v235_v47 = vld [vmem:[#allocation7 + $0x50] sm:$0xff] }
  0x20   :  { %476 = vset.pattern.permute.xlu0 %v648_v6  ;;  %v234_v48 = vld [vmem:[#allocation7 + $0x48] sm:$0xff]  ;;  %v233_v49 = vld [vmem:[#allocation7 + $0x40] sm:$0xff]  ;;  %v232_v50 = vld [vmem:[#allocation7 + $0x38] sm:$0xff] }
  0x21   :  { %129 = vperm.xlu0 %476, %v127_v4   ;;  %478 = vset.pattern.permute.xlu1 %v649_v7  ;;  %v231_v51 = vld [vmem:[#allocation7 + $0x30] sm:$0xff]  ;;  %v230_v52 = vld [vmem:[#allocation7 + $0x28] sm:$0xff]  ;;  %v229_v53 = vld [vmem:[#allocation7 + $0x20] sm:$0xff] }
  0x22   :  { %145 = vperm.xlu1 %478, %v143_v5   ;;  %208 = vmatpush.msra.mxu1 %v195_v16  ;;  %v228_v54 = vld [vmem:[#allocation7 + $0x18] sm:$0xff]  ;;  %v480_v55 = vld [vmem:[%s763_s2] ss:$0 sm:$0xff]  ;;  %v227_v59 = vld [vmem:[#allocation7 + $0x10] sm:$0xff] }
  0x23   :  { %246 = vmatpush.msra.mxu2 %v239_v43  ;;  %v226_v60 = vld [vmem:[#allocation7 + $0x8] sm:$0xff]  ;;  %v225_v61 = vld [vmem:[#allocation7] sm:$0xff]  ;;  %v281_v62 = vld [vmem:[#allocation8 + $0x78] sm:$0xff] }
  0x24   :  { %209 = vmatpush.msra.mxu1 %v194_v17  ;;  %v280_v63 = vld [vmem:[#allocation8 + $0x70] sm:$0xff]  ;;  %286 = vmatpush.msra.mxu3 %v281_v62  ;;  %v279_v0 = vld [vmem:[#allocation8 + $0x68] sm:$0xff]  ;;  %v278_v1 = vld [vmem:[#allocation8 + $0x60] sm:$0xff] }
  0x25   :  { %247 = vmatpush.msra.mxu2 %v238_v44  ;;  %v277_v2 = vld [vmem:[#allocation8 + $0x58] sm:$0xff]  ;;  %v276_v3 = vld [vmem:[#allocation8 + $0x50] sm:$0xff]  ;;  %v275_v4 = vld [vmem:[#allocation8 + $0x48] sm:$0xff] }
  0x26   :  { %210 = vmatpush.msra.mxu1 %v193_v18  ;;  %287 = vmatpush.msra.mxu3 %v280_v63  ;;  %v274_v5 = vld [vmem:[#allocation8 + $0x40] sm:$0xff]  ;;  %v273_v6 = vld [vmem:[#allocation8 + $0x38] sm:$0xff]  ;;  %v271_v8 = vld [vmem:[#allocation8 + $0x28] sm:$0xff] }
  0x27   :  { %248 = vmatpush.msra.mxu2 %v237_v45  ;;  %v270_v9 = vld [vmem:[#allocation8 + $0x20] sm:$0xff]  ;;  %v269_v10 = vld [vmem:[#allocation8 + $0x18] sm:$0xff]  ;;  %v268_v15 = vld [vmem:[#allocation8 + $0x10] sm:$0xff] }
  0x28   :  { %211 = vmatpush.msra.mxu1 %v192_v19  ;;  %288 = vmatpush.msra.mxu3 %v279_v0  ;;  %v481_v11 = vld [vmem:[%s765_s4] ss:$0 sm:$0xff]  ;;  %v267_v16 = vld [vmem:[#allocation8 + $0x8] sm:$0xff]  ;;  %v324_v18 = vld [vmem:[#allocation7 + $0xf8] sm:$0xff] }
  0x29   :  { %479 = vset.pattern.permute.xlu0 %v649_v7  ;;  %249 = vmatpush.msra.mxu2 %v236_v46  ;;  %v272_v7 = vld [vmem:[#allocation8 + $0x30] sm:$0xff]  ;;  %v266_v17 = vld [vmem:[#allocation8] sm:$0xff]  ;;  %v322_v20 = vld [vmem:[#allocation7 + $0xe8] sm:$0xff] }
  0x2a   :  { %212 = vmatpush.msra.mxu1 %v191_v22  ;;  %289 = vmatpush.msra.mxu3 %v278_v1  ;;  %v323_v19 = vld [vmem:[#allocation7 + $0xf0] sm:$0xff]  ;;  %v320_v22 = vld [vmem:[#allocation7 + $0xd8] sm:$0xff]  ;;  %v361_v44 = vld [vmem:[#allocation8 + $0xc8] sm:$0xff] }
  0x2b   :  { %250 = vmatpush.msra.mxu2 %v235_v47  ;;  %330 = vmatpush.msrb.mxu0 %v324_v18  ;;  %v363_v42 = vld [vmem:[#allocation8 + $0xd8] sm:$0xff]  ;;  %v362_v43 = vld [vmem:[#allocation8 + $0xd0] sm:$0xff]  ;;  %v360_v45 = vld [vmem:[#allocation8 + $0xc0] sm:$0xff] }
  0x2c   :  { %213 = vmatpush.msra.mxu1 %v190_v24  ;;  %290 = vmatpush.msra.mxu3 %v277_v2  ;;  %v318_v24 = vld [vmem:[#allocation7 + $0xc8] sm:$0xff]  ;;  %v359_v46 = vld [vmem:[#allocation8 + $0xb8] sm:$0xff]  ;;  %v358_v47 = vld [vmem:[#allocation8 + $0xb0] sm:$0xff] }
  0x2d   :  { %251 = vmatpush.msra.mxu2 %v234_v48  ;;  %331 = vmatpush.msrb.mxu0 %v323_v19  ;;  %v357_v48 = vld [vmem:[#allocation8 + $0xa8] sm:$0xff]  ;;  %v407_v62 = vld [vmem:[#allocation10 + $0x60] sm:$0xff]  ;;  %v406_v63 = vld [vmem:[#allocation10 + $0x58] sm:$0xff] }
  0x2e   :  { %214 = vmatpush.msra.mxu1 %v189_v26  ;;  %291 = vmatpush.msra.mxu3 %v276_v3  ;;  %v316_v26 = vld [vmem:[#allocation7 + $0xb8] sm:$0xff]  ;;  %v405_v0 = vld [vmem:[#allocation10 + $0x50] sm:$0xff]  ;;  %v404_v1 = vld [vmem:[#allocation10 + $0x48] sm:$0xff] }
  0x2f   :  { %252 = vmatpush.msra.mxu2 %v233_v49  ;;  %332 = vmatpush.msrb.mxu0 %v322_v20  ;;  %v356_v49 = vld [vmem:[#allocation8 + $0xa0] sm:$0xff]  ;;  %v402_v3 = vld [vmem:[#allocation10 + $0x38] sm:$0xff] }
  0x30   :  { %215 = vmatpush.msra.mxu1 %v188_v27  ;;  %292 = vmatpush.msra.mxu3 %v275_v4  ;;  %v315_v27 = vld [vmem:[#allocation7 + $0xb0] sm:$0xff]  ;;  %v403_v2 = vld [vmem:[#allocation10 + $0x40] sm:$0xff] }
  0x31   :  { %253 = vmatpush.msra.mxu2 %v232_v50  ;;  %v483_v50 = vld [vmem:[%s769_s8] ss:$0 sm:$0xff]  ;;  %v401_v4 = vld [vmem:[#allocation10 + $0x30] sm:$0xff] }
  0x32   :  { %216 = vmatpush.msra.mxu1 %v187_v28  ;;  %293 = vmatpush.msra.mxu3 %v274_v5  ;;  %v314_v28 = vld [vmem:[#allocation7 + $0xa8] sm:$0xff]  ;;  %v486_v20 = vld [vmem:[%s771_s10] ss:$0 sm:$0xff] }
  0x33   :  { %254 = vmatpush.msra.mxu2 %v231_v51  ;;  %v355_v51 = vld [vmem:[#allocation8 + $0x98] sm:$0xff]  ;;  %v400_v5 = vld [vmem:[#allocation10 + $0x28] sm:$0xff] }
  0x34   :  { %217 = vmatpush.msra.mxu1 %v186_v39  ;;  %294 = vmatpush.msra.mxu3 %v273_v6  ;;  %v366_v39 = vld [vmem:[#allocation8 + $0xf0] sm:$0xff]  ;;  %v399_v6 = vld [vmem:[#allocation10 + $0x20] sm:$0xff] }
  0x35   :  { %255 = vmatpush.msra.mxu2 %v230_v52 }
  0x36   :  { %218 = vmatpush.msra.mxu1 %v185_v40  ;;  %295 = vmatpush.msra.mxu3 %v272_v7  ;;  %v365_v40 = vld [vmem:[#allocation8 + $0xe8] sm:$0xff]  ;;  %v484_v7 = vld [vmem:[%s767_s6 + $0x1] ss:$0 sm:$0xff] }
  0x37   :  { %256 = vmatpush.msra.mxu2 %v229_v53 }
  0x38   :  { %219 = vmatpush.msra.mxu1 %v184_v41  ;;  %296 = vmatpush.msra.mxu3 %v271_v8  ;;  %v364_v41 = vld [vmem:[#allocation8 + $0xe0] sm:$0xff] }
  0x39   :  { %257 = vmatpush.msra.mxu2 %v228_v54 }
  0x3a   :  { %297 = vmatpush.msra.mxu3 %v270_v9 }
  0x3b   :  { %258 = vmatpush.msra.mxu2 %v227_v59  ;;  %v410_v59 = vld [vmem:[#allocation10 + $0x78] sm:$0xff] }
  0x3c   :  { %298 = vmatpush.msra.mxu3 %v269_v10 }
  0x3d   :  { %259 = vmatpush.msra.mxu2 %v226_v60  ;;  %v409_v60 = vld [vmem:[#allocation10 + $0x70] sm:$0xff] }
  0x3e   :  { %299 = vmatpush.msra.mxu3 %v268_v15  ;;  %v485_v15 = vld [vmem:[%s769_s8 + $0x1] ss:$0 sm:$0xff] }
  0x3f   :  { %260 = vmatpush.msra.mxu2 %v225_v61  ;;  %v408_v61 = vld [vmem:[#allocation10 + $0x68] sm:$0xff] }
  0x40   :  { %300 = vmatpush.msra.mxu3 %v267_v16 }
  0x41   :  { %415 = vmatpush.msrb.mxu2 %v410_v59 }
  0x42   :  { %301 = vmatpush.msra.mxu3 %v266_v17 }
  0x43   :  { %416 = vmatpush.msrb.mxu2 %v409_v60 }
  0x45   :  { %417 = vmatpush.msrb.mxu2 %v408_v61 }
  0x47   :  { %418 = vmatpush.msrb.mxu2 %v407_v62 }
  0x49   :  { %419 = vmatpush.msrb.mxu2 %v406_v63 }
  0x4b   :  { %420 = vmatpush.msrb.mxu2 %v405_v0 }
  0x4d   :  { %421 = vmatpush.msrb.mxu2 %v404_v1 }
  0x4f   :  { %422 = vmatpush.msrb.mxu2 %v403_v2 }
  0x51   :  { %423 = vmatpush.msrb.mxu2 %v402_v3 }
  0x53   :  { %424 = vmatpush.msrb.mxu2 %v401_v4 }
  0x55   :  { %425 = vmatpush.msrb.mxu2 %v400_v5 }
  0x57   :  { %426 = vmatpush.msrb.mxu2 %v399_v6 }
  0x8a   :  { %v122_v21 = vpop.permute.xlu0 %121 }
  0x8b   :  { %v138_v23 = vpop.permute.xlu1 %137  ;;  %vm123_vm0 = vcmp.eq.s32.totalorder %v118_v25, %v122_v21  ;;  %v321_v21 = vld [vmem:[#allocation7 + $0xe0] sm:$0xff] }
  0x8c   :  { %vm139_vm1 = vcmp.eq.s32.totalorder %v118_v25, %v138_v23  ;;  %v455_v31 = vsel %vm123_vm0, 1.0, %v650_v30  ;;  %333 = vmatpush.msrb.mxu0 %v321_v21  ;;  %v319_v23 = vld [vmem:[#allocation7 + $0xd0] sm:$0xff] }
  0x8d   :  { %v457_v35 = vsel %vm139_vm1, 1.0, %v650_v30 }
  0x8e   :  { %334 = vmatpush.msrb.mxu0 %v320_v22 }
  0x90   :  { %335 = vmatpush.msrb.mxu0 %v319_v23 }
  0x92   :  { %336 = vmatpush.msrb.mxu0 %v318_v24 }
  0x93   :  { %v130_v29 = vpop.permute.xlu0 %129 }
  0x94   :  { %vm131_vm2 = vcmp.eq.s32.totalorder %v118_v25, %v130_v29  ;;  %v146_v33 = vpop.permute.xlu1 %145  ;;  %v313_v29 = vld [vmem:[#allocation7 + $0xa0] sm:$0xff] }
  0x95   :  { %v456_v32 = vsel %vm131_vm2, 1.0, %v650_v30  ;;  %vm147_vm3 = vcmp.eq.s32.totalorder %v118_v25, %v146_v33  ;;  %v317_v25 = vld [vmem:[#allocation7 + $0xc0] sm:$0xff] }
  0x96   :  { %v134_v34 = vadd.f32 %v456_v32, %v455_v31  ;;  %v458_v36 = vsel %vm147_vm3, 1.0, %v650_v30  ;;  %337 = vmatpush.msrb.mxu0 %v317_v25  ;;  %v482_v30 = vld [vmem:[%s767_s6] ss:$0 sm:$0xff] }
  0x98   :  { %v142_v37 = vadd.f32 %v457_v35, %v134_v34  ;;  %338 = vmatpush.msrb.mxu0 %v316_v26  ;;  %v312_v34 = vld [vmem:[#allocation7 + $0x98] sm:$0xff]  ;;  %v311_v35 = vld [vmem:[#allocation7 + $0x90] sm:$0xff] }
  0x9a   :  { %v150_v38 = vadd.f32 %v458_v36, %v142_v37  ;;  %339 = vmatpush.msrb.mxu0 %v315_v27  ;;  %v310_v36 = vld [vmem:[#allocation7 + $0x88] sm:$0xff]  ;;  %v309_v37 = vld [vmem:[#allocation7 + $0x80] sm:$0xff] }
  0x9c   :  { %459 = vmatmul.msk.f32.vlgmr.msra.gmra.mxu0 %vm159_vm4, %v150_v38  ;;  %v367_v38 = vld [vmem:[#allocation8 + $0xf8] sm:$0xff] }
  0x9d   :  { %340 = vmatpush.msrb.mxu0 %v314_v28  ;;  %373 = vmatpush.msrb.mxu1 %v367_v38 }
  0x9f   :  { %341 = vmatpush.msrb.mxu0 %v313_v29  ;;  %374 = vmatpush.msrb.mxu1 %v366_v39 }
  0xa1   :  { %342 = vmatpush.msrb.mxu0 %v312_v34  ;;  %375 = vmatpush.msrb.mxu1 %v365_v40 }
  0xa3   :  { %343 = vmatpush.msrb.mxu0 %v311_v35  ;;  %376 = vmatpush.msrb.mxu1 %v364_v41 }
  0xa5   :  { %344 = vmatpush.msrb.mxu0 %v310_v36  ;;  %377 = vmatpush.msrb.mxu1 %v363_v42 }
  0xa7   :  { %345 = vmatpush.msrb.mxu0 %v309_v37  ;;  %378 = vmatpush.msrb.mxu1 %v362_v43 }
  0xa9   :  { %379 = vmatpush.msrb.mxu1 %v361_v44 }
  0xab   :  { %380 = vmatpush.msrb.mxu1 %v360_v45 }
  0xad   :  { %381 = vmatpush.msrb.mxu1 %v359_v46 }
  0xaf   :  { %382 = vmatpush.msrb.mxu1 %v358_v47 }
  0xb1   :  { %383 = vmatpush.msrb.mxu1 %v357_v48 }
  0xb3   :  { %384 = vmatpush.msrb.mxu1 %v356_v49 }
  0xb5   :  { %385 = vmatpush.msrb.mxu1 %v355_v51 }
 0x119   :  { %v180_v56 = vpop.f32.mrf.mxu0 }
 0x11a   :  { %v181_v57 = vadd.f32 %v480_v55, %v180_v56  ;;  %v354_v56 = vld [vmem:[#allocation8 + $0x90] sm:$0xff] }
 0x11b   :  { %386 = vmatpush.msrb.mxu1 %v354_v56 }
 0x11c   :  { %v183_v58 = vmax.f32 %v181_v57, 0.0  ;;  %v353_v57 = vld [vmem:[#allocation8 + $0x88] sm:$0xff] }
 0x11d   :  { %387 = vmatpush.msrb.mxu1 %v353_v57 }
 0x11e   :  { %220 = vmatmul.f32.vlgmr.msra.gmra.mxu1 %v183_v58  ;;  %v352_v58 = vld [vmem:[#allocation8 + $0x80] sm:$0xff] }
 0x11f   :  { %388 = vmatpush.msrb.mxu1 %v352_v58 }
 0x19b   :  { %v221_v12 = vpop.f32.mrf.mxu1 }
 0x19c   :  { %v736_v13 = vadd.f32 %v481_v11, %v221_v12  ;;  %v398_v11 = vld [vmem:[#allocation10 + $0x18] sm:$0xff]  ;;  %v397_v12 = vld [vmem:[#allocation10 + $0x10] sm:$0xff] }
 0x19d   :  { %427 = vmatpush.msrb.mxu2 %v398_v11 }
 0x19e   :  { %v224_v14 = vmax.f32 %v736_v13, 0.0  ;;  %v396_v13 = vld [vmem:[#allocation10 + $0x8] sm:$0xff] }
 0x19f   :  { %428 = vmatpush.msrb.mxu2 %v397_v12 }
 0x1a0   :  { %261 = vmatmul.f32.vlgmr.msra.gmra.mxu2 %v224_v14 }
 0x1a1   :  { %429 = vmatpush.msrb.mxu2 %v396_v13 }
 0x223   :  { %v262_v31 = vpop.f32.mrf.mxu2 }
 0x224   :  { %v263_v32 = vadd.f32 %v482_v30, %v262_v31 }
 0x226   :  { %v265_v33 = vmax.f32 %v263_v32, 0.0 }
 0x228   :  { %302 = vmatmul.f32.vlgmr.msra.gmra.mxu3 %v265_v33 }
 0x2ab   :  { %v303_v52 = vpop.f32.mrf.mxu3 }
 0x2ac   :  { %v304_v53 = vadd.f32 %v483_v50, %v303_v52 }
 0x2ae   :  { %v306_v54 = vadd.f32 %v304_v53, %v224_v14  ;;  %v395_v14 = vld [vmem:[#allocation10] sm:$0xff] }
 0x2af   :  { %430 = vmatpush.msrb.mxu2 %v395_v14 }
 0x2b0   :  { %v307_v55 = vmax.f32 %v306_v54, 0.0 }
 0x2b2   :  { %346 = vmatmul.f32.vlgmr.msrb.gmra.mxu0 %v307_v55 }
 0x32f   :  { %v347_v8 = vpop.f32.mrf.mxu0 }
 0x330   :  { %v348_v9 = vadd.f32 %v484_v7, %v347_v8 }
 0x332   :  { %v350_v10 = vmax.f32 %v348_v9, 0.0 }
 0x334   :  { %389 = vmatmul.f32.vlgmr.msrb.gmra.mxu1 %v350_v10 }
 0x3b1   :  { %v390_v16 = vpop.f32.mrf.mxu1 }
 0x3b2   :  { %v391_v17 = vadd.f32 %v485_v15, %v390_v16 }
 0x3b4   :  { %v393_v18 = vadd.f32 %v391_v17, %v307_v55 }
 0x3b6   :  { %v394_v19 = vmax.f32 %v393_v18, 0.0 }
 0x3b8   :  { %431 = vmatmul.f32.vlgmr.msrb.gmra.mxu2 %v394_v19 }
 0x43b   :  { %v432_v21 = vpop.f32.mrf.mxu2 }
 0x43c   :  { %v433_v22 = vadd.f32 %v486_v20, %v432_v21 }
 0x43e   :  { %435 = vst [vmem:[#allocation11] sm:$0xff] %v433_v22 }
 0x43f   :  { %446 = dma.vmem_to_hbm [thread:$0]  %s442_s13, 128, %s444_s16, [#allocation4]  }
 0x440   :  { %637 = dma.done.wait [#allocation4], 128  }
 0x441   :  { %638 = vsyncadd [#allocation4], 4294967168 }
 0x442   :  { %451 = vsyncpa [#allocation3], 1 }
 0x443   :  { %452 = vsyncpa [#allocation6], 1 }
 0x444   :  { %453 = vsyncpa [#allocation9], 1 }
 0x445   :  { %454 = vsyncpa [#allocation4], 1 }

</bundles_post_ra>
